<compile_context>
chip_gen: v7x
topology: tpu7x:2x2x1
jax: 0.10.0
libtpu: 0.0.40
codegen_flags: <defaults>
</compile_context>

<pallas_src>
import functools

import jax
import jax.numpy as jnp
from jax.experimental import pallas as pl
from jax.experimental.pallas import tpu as pltpu


def _round_up(x, m):
    return ((x + m - 1) // m) * m


# ---------------------------------------------------------------------------
# Pallas kernels
# ---------------------------------------------------------------------------

def _dino_fused_kernel(mask_ref, patch_ref, wdino_ref, wattr_ref, battr_ref,
                       vis_ref, attr_ref):
    # Fused: masked region pooling -> DINO patch-embedding projection ->
    # trained-attribute head (linear + sigmoid).  All operands stay in VMEM.
    m = mask_ref[...]                                              # (Rt, P) f32
    # Pool patch pixels FIRST (R << P), then project.  Algebraically identical
    # to projecting every patch and pooling afterwards (both ops are linear).
    area = jnp.maximum(jnp.sum(m, axis=-1, keepdims=True), 1e-6)   # allow empty masks
    pooled = jnp.dot(m.astype(jnp.bfloat16), patch_ref[...],
                     preferred_element_type=jnp.float32)           # (Rt, Kp) f32
    vis = jnp.dot(pooled.astype(jnp.bfloat16), wdino_ref[...],
                  preferred_element_type=jnp.float32) / area       # (Rt, D_dino)
    vis_ref[...] = vis
    # Trained attribute predictor head, fed straight from the VMEM value.
    logits = jnp.dot(vis, wattr_ref[...],
                     preferred_element_type=jnp.float32) + battr_ref[...]
    attr_ref[...] = jax.nn.sigmoid(logits)                         # (Rt, A_pad)


def _clip_visual_kernel(x_ref, w_ref, o_ref, *, fuse_norm):
    # Synthetic CLIP visual encoder: K-streamed linear projection (+ fused L2
    # norm when the whole d_clip lives in one N tile).
    # x_ref: resident (nk, rows_pad, tile_k) bf16 pixels (loaded once).
    # w_ref: (tile_k, tile_n) bf16 weight tile streamed from HBM.
    # o_ref: (rows_pad, tile_n) f32, VMEM-resident across the K axis.
    k = pl.program_id(1)

    @pl.when(k == 0)
    def _():
        o_ref[...] = jnp.zeros_like(o_ref)

    o_ref[...] += jnp.dot(x_ref[k], w_ref[...],
                          preferred_element_type=jnp.float32)

    if fuse_norm:
        @pl.when(k == pl.num_programs(1) - 1)
        def _():
            y = o_ref[...]
            inv = jax.lax.rsqrt(jnp.sum(y * y, axis=-1, keepdims=True) + 1e-6)
            o_ref[...] = y * inv


# ---------------------------------------------------------------------------
# pallas_call wrappers
# ---------------------------------------------------------------------------

def _dino_fused(patch_masks, patches, w_dino, w_attr, b_attr, *, row_tile):
    rows_pad, n_patches = patch_masks.shape
    d_dino = w_dino.shape[1]
    n_attr_pad = w_attr.shape[1]
    n_row_tiles = rows_pad // row_tile
    return pl.pallas_call(
        _dino_fused_kernel,
        out_shape=(jax.ShapeDtypeStruct((rows_pad, d_dino), jnp.float32),
                   jax.ShapeDtypeStruct((rows_pad, n_attr_pad), jnp.float32)),
        grid_spec=pltpu.PrefetchScalarGridSpec(
            num_scalar_prefetch=0,
            grid=(n_row_tiles,),
            in_specs=[pl.BlockSpec((row_tile, n_patches), lambda i: (i, 0)),
                      pl.BlockSpec(patches.shape, lambda i: (0, 0)),
                      pl.BlockSpec(w_dino.shape, lambda i: (0, 0)),
                      pl.BlockSpec(w_attr.shape, lambda i: (0, 0)),
                      pl.BlockSpec(b_attr.shape, lambda i: (0, 0))],
            out_specs=(pl.BlockSpec((row_tile, d_dino), lambda i: (i, 0)),
                       pl.BlockSpec((row_tile, n_attr_pad), lambda i: (i, 0))),
        ),
        compiler_params=pltpu.CompilerParams(
            dimension_semantics=("parallel",)),
    )(patch_masks, patches, w_dino, w_attr, b_attr)


def _clip_visual(x3_bf16, w_clip_bf16, *, tile_n):
    # x3_bf16: (nk, rows_pad, tile_k) bf16, kept fully VMEM-resident.
    nk, rows_pad, tile_k = x3_bf16.shape
    d_clip = w_clip_bf16.shape[1]
    nn = d_clip // tile_n
    fuse_norm = (nn == 1)

    # Scoped-VMEM budget: resident pixels (double-buffered by the pipeline),
    # double-buffered bf16 weight tile, resident f32 output block, slack.
    vmem_bytes = (2 * x3_bf16.size * 2
                  + 2 * tile_k * tile_n * 2
                  + 2 * rows_pad * tile_n * 4
                  + (4 << 20))
    # NOTE: tile_k should be re-swept per generation (v7x has 64MiB physical
    # VMEM vs 128MiB on v5e/v6e); the cap below keeps the request sane.
    vmem_limit = int(min(max(vmem_bytes, 32 << 20), 100 << 20))

    out = pl.pallas_call(
        functools.partial(_clip_visual_kernel, fuse_norm=fuse_norm),
        out_shape=jax.ShapeDtypeStruct((rows_pad, d_clip), jnp.float32),
        grid_spec=pltpu.PrefetchScalarGridSpec(
            num_scalar_prefetch=0,
            grid=(nn, nk),
            in_specs=[pl.BlockSpec((nk, rows_pad, tile_k),
                                   lambda n, k: (0, 0, 0)),
                      pl.BlockSpec((tile_k, tile_n), lambda n, k: (k, n))],
            out_specs=pl.BlockSpec((rows_pad, tile_n), lambda n, k: (0, n)),
        ),
        compiler_params=pltpu.CompilerParams(
            dimension_semantics=("parallel", "arbitrary"),
            vmem_limit_bytes=vmem_limit),
    )(x3_bf16, w_clip_bf16)

    if not fuse_norm:
        # d_clip was split across N tiles (v7x dual-TC path): normalize the
        # tiny (rows_pad, d_clip) result outside the kernel.
        inv = jax.lax.rsqrt(jnp.sum(out * out, axis=-1, keepdims=True) + 1e-6)
        out = out * inv
    return out


# ---------------------------------------------------------------------------
# Glue (reshapes / parameter setup) in plain JAX
# ---------------------------------------------------------------------------

def _patchify(image, ps):
    # (H, W, C) -> (P, ps*ps*C)
    H, W, C = image.shape
    x = image.reshape(H // ps, ps, W // ps, ps, C)
    x = jnp.transpose(x, (0, 2, 1, 3, 4))
    return x.reshape((H // ps) * (W // ps), ps * ps * C)


def _masks_to_patch_grid(masks, ps):
    # (R, H, W) bool -> (R, P) fractional-coverage mask on the patch grid
    # (stand-in for interpolate_masks down to DINO's patch resolution).
    R, H, W = masks.shape
    m = masks.astype(jnp.float32).reshape(R, H // ps, ps, W // ps, ps)
    m = m.mean(axis=(2, 4))
    return m.reshape(R, (H // ps) * (W // ps))


def init_params(key, *, patch_size, channels, image_hw, d_dino, d_clip, n_attrs):
    k1, k2, k3, k4 = jax.random.split(key, 4)
    patch_dim = patch_size * patch_size * channels
    patch_dim_pad = _round_up(patch_dim, 128)          # lane-dense K for the MXU
    pixel_dim = image_hw * image_hw * channels
    # Big K tiles amortize the ~0.35us/step grid overhead against the HBM
    # weight stream (sweep 4096-8192+ per generation at realistic pixel_dim).
    tile_k = min(_round_up(pixel_dim, 128), 8192)
    pixel_dim_pad = _round_up(pixel_dim, tile_k)
    n_attrs_pad = _round_up(n_attrs, 128)              # lane-dense attr output

    assert d_clip % 128 == 0, "d_clip must be lane-dense (multiple of 128)"
    # Split d_clip across two N tiles when possible so v7x's two TensorCores
    # each stream half of w_clip (no effect on single-TC v5e/v6e).
    nn = 2 if (d_clip % 256 == 0) else 1
    tile_n = d_clip // nn

    # TODO(synk): DINO ViT backbone replaced by a single patch-embedding matmul.
    w_dino = jax.random.normal(k1, (patch_dim, d_dino), jnp.float32) * 0.05
    w_dino = jnp.pad(w_dino, ((0, patch_dim_pad - patch_dim), (0, 0)))
    w_dino = w_dino.astype(jnp.bfloat16)               # streamed weight -> bf16

    # TODO(synk): CLIP ViT image encoder replaced by linear projection + L2 norm.
    w_clip = jax.random.normal(k2, (pixel_dim, d_clip), jnp.float32) * 0.02
    w_clip = jnp.pad(w_clip, ((0, pixel_dim_pad - pixel_dim), (0, 0)))
    w_clip = w_clip.astype(jnp.bfloat16)               # streamed weight -> bf16
    # TODO(synk): optional int8 (v5e/v6e) / fp8 (v7x) weight quantization would
    # halve the dominant HBM stream again; skipped to keep numerics unchanged.

    w_attr = jax.random.normal(k3, (d_dino, n_attrs), jnp.float32) * 0.1
    w_attr = jnp.pad(w_attr, ((0, 0), (0, n_attrs_pad - n_attrs)))
    b_attr = jax.random.normal(k4, (1, n_attrs), jnp.float32) * 0.1
    b_attr = jnp.pad(b_attr, ((0, 0), (0, n_attrs_pad - n_attrs)))

    return {
        "patch_size": patch_size,
        "n_attrs": n_attrs,
        "tile_k": tile_k,
        "tile_n": tile_n,
        "w_dino": w_dino,
        "w_clip": w_clip,
        "w_attr": w_attr,
        "b_attr": b_attr,
    }


def feature_extractor_forward(params, image, regions, object_mask, region_masks):
    """JAX/Pallas analog of FeatureExtractor.forward (use_cls_features=False path)."""
    ps = params["patch_size"]
    n_regions = regions.shape[0]
    rows = 1 + n_regions
    rows_pad = _round_up(rows, 16)                     # dense bf16 sublane packing
    row_tile = rows_pad if rows_pad <= 256 else 256    # v7x-friendly rows grid
    rows_pad = _round_up(rows_pad, row_tile)
    n_attrs = params["n_attrs"]

    # --- DINO patch pixels + region masks on the patch grid -------------------
    patches = _patchify(image, ps)                                  # (P, patch_dim)
    patch_dim_pad = params["w_dino"].shape[0]
    patches = jnp.pad(patches, ((0, 0), (0, patch_dim_pad - patches.shape[1])))
    patches = patches.astype(jnp.bfloat16)

    all_masks = jnp.concatenate([object_mask[None, ...], region_masks], axis=0)
    patch_masks = _masks_to_patch_grid(all_masks, ps)               # (rows, P) f32
    patch_masks = jnp.pad(patch_masks, ((0, rows_pad - rows), (0, 0)))

    # --- fused: region pool -> DINO projection -> trained-attr head -----------
    vis_pad, attr_pad = _dino_fused(patch_masks, patches,
                                    params["w_dino"], params["w_attr"],
                                    params["b_attr"], row_tile=row_tile)
    visual_features = vis_pad[:rows]                                # (rows, D_dino)
    trained_attr_scores = attr_pad[:rows, :n_attrs]                 # (rows, n_attrs)

    # --- CLIP visual features for [image] + regions (K-streamed bf16) ---------
    all_imgs = jnp.concatenate([image[None, ...], regions], axis=0)
    flat = all_imgs.reshape(rows, -1)                               # (rows, H*W*C)
    pixel_dim_pad = params["w_clip"].shape[0]
    tile_k = params["tile_k"]
    nk = pixel_dim_pad // tile_k
    flat = jnp.pad(flat, ((0, rows_pad - rows),
                          (0, pixel_dim_pad - flat.shape[1])))
    flat = flat.astype(jnp.bfloat16)
    # (rows_pad, nk*tile_k) -> (nk, rows_pad, tile_k): the whole pixel operand
    # stays VMEM-resident; the kernel indexes K chunks with x_ref[k].
    flat3 = flat.reshape(rows_pad, nk, tile_k).transpose(1, 0, 2)
    clip_visual = _clip_visual(flat3, params["w_clip"],
                               tile_n=params["tile_n"])[:rows]      # (rows, D_clip)

    region_weights = jnp.ones((n_regions,), jnp.float32) / n_regions

    # ImageFeatures analog
    return {
        "image_features": visual_features[:1],                      # (1, D_dino)
        "clip_image_features": clip_visual[:1],                     # (1, D_clip)
        "region_features": visual_features[1:],                     # (n, D_dino)
        "clip_region_features": clip_visual[1:],                    # (n, D_clip)
        "region_weights": region_weights,                           # (n,)
        "trained_attr_img_scores": trained_attr_scores[:1],         # (1, n_attrs)
        "trained_attr_region_scores": trained_attr_scores[1:],      # (n, n_attrs)
    }


# ---------------------------------------------------------------------------
# Example / smoke test
# ---------------------------------------------------------------------------

if __name__ == "__main__":
    H = W = 32
    C = 3
    PATCH = 4
    D_DINO = 128
    D_CLIP = 128
    N_ATTRS = 16
    N_REGIONS = 3

    key = jax.random.PRNGKey(0)
    k_params, k_img, k_reg, k_om, k_rm = jax.random.split(key, 5)

    params = init_params(
        k_params, patch_size=PATCH, channels=C, image_hw=H,
        d_dino=D_DINO, d_clip=D_CLIP, n_attrs=N_ATTRS,
    )

    image = jax.random.uniform(k_img, (H, W, C), jnp.float32)
    regions = jax.random.uniform(k_reg, (N_REGIONS, H, W, C), jnp.float32)
    object_mask = jax.random.bernoulli(k_om, 0.7, (H, W))
    region_masks = jax.random.bernoulli(k_rm, 0.4, (N_REGIONS, H, W))

    fwd = jax.jit(functools.partial(feature_extractor_forward, params))
    out = fwd(image, regions, object_mask, region_masks)
    jax.block_until_ready(out)

    assert out["image_features"].shape == (1, D_DINO)
    assert out["region_features"].shape == (N_REGIONS, D_DINO)
    assert out["clip_image_features"].shape == (1, D_CLIP)
    assert out["clip_region_features"].shape == (N_REGIONS, D_CLIP)
    assert out["region_weights"].shape == (N_REGIONS,)
    assert out["trained_attr_img_scores"].shape == (1, N_ATTRS)
    assert out["trained_attr_region_scores"].shape == (N_REGIONS, N_ATTRS)

    # Sanity: CLIP rows are L2-normalized; everything finite; scores in (0,1).
    clip_all = jnp.concatenate([out["clip_image_features"],
                                out["clip_region_features"]], axis=0)
    norms = jnp.linalg.norm(clip_all, axis=-1)
    assert bool(jnp.all(jnp.abs(norms - 1.0) < 5e-2))
    for v in out.values():
        assert bool(jnp.all(jnp.isfinite(v)))
    scores = jnp.concatenate([out["trained_attr_img_scores"],
                              out["trained_attr_region_scores"]], axis=0)
    assert bool(jnp.all((scores > 0.0) & (scores < 1.0)))

    print("KERNEL_OK")
</pallas_src>

<mosaic_0001>
module attributes {stable_mosaic.version = 11 : i64} {
  func.func @_clip_visual_kernel(%arg0: i32, %arg1: i32, %arg2: memref<1x16x3072xbf16, #tpu.memory_space<vmem>>, %arg3: memref<3072x128xbf16, #tpu.memory_space<vmem>>, %arg4: memref<16x128xf32, #tpu.memory_space<vmem>>) attributes {dimension_semantics = [#tpu.dimension_semantics<parallel>, #tpu.dimension_semantics<arbitrary>], iteration_bounds = array<i64: 1, 1>, scalar_prefetch = 0 : i64, scratch_operands = 0 : i64, tpu.core_type = #tpu.core_type<tc>, window_params = [{pipeline_mode = #tpu.pipeline_mode<synchronous>, transform_indices = @transform_0, window_bounds = array<i64: 1, 16, 3072>}, {transform_indices = @transform_1, window_bounds = array<i64: 3072, 128>}, {transform_indices = @transform_2, window_bounds = array<i64: 16, 128>}]} {
    %c0_i32 = arith.constant 0 : i32
    %0 = arith.cmpi eq, %arg1, %c0_i32 : i32
    %1 = arith.extui %0 : i1 to i32
    %c0_i32_0 = arith.constant 0 : i32
    %2 = arith.cmpi ne, %1, %c0_i32_0 : i32
    scf.if %2 {
      %cst_10 = arith.constant 0.000000e+00 : f32
      %14 = vector.broadcast %cst_10 : f32 to vector<16x128xf32>
      %c0_11 = arith.constant 0 : index
      %c0_12 = arith.constant 0 : index
      %15 = vector.load %arg4[%c0_11, %c0_12] : memref<16x128xf32, #tpu.memory_space<vmem>>, vector<16x128xf32>
      tpu.vector_store %arg4[%c0_11, %c0_12], %14 {strides = array<i32>} : memref<16x128xf32, #tpu.memory_space<vmem>>, vector<16x128xf32>,
    } else {
    }
    %c0 = arith.constant 0 : index
    %c0_1 = arith.constant 0 : index
    %3 = vector.load %arg4[%c0, %c0_1] : memref<16x128xf32, #tpu.memory_space<vmem>>, vector<16x128xf32>
    %4 = arith.index_cast %arg1 : i32 to index
    %c0_2 = arith.constant 0 : index
    %c0_3 = arith.constant 0 : index
    %5 = vector.load %arg2[%4, %c0_2, %c0_3] : memref<1x16x3072xbf16, #tpu.memory_space<vmem>>, vector<1x16x3072xbf16>
    %6 = vector.shape_cast %5 : vector<1x16x3072xbf16> to vector<16x3072xbf16>
    %c0_4 = arith.constant 0 : index
    %c0_5 = arith.constant 0 : index
    %7 = vector.load %arg3[%c0_4, %c0_5] : memref<3072x128xbf16, #tpu.memory_space<vmem>>, vector<3072x128xbf16>
    %cst = arith.constant dense<0.000000e+00> : vector<16x128xf32>
    %8 = tpu.matmul %6, %7, %cst {dimension_numbers = #tpu.dot_dimension_numbers<[1], [0], [0], [1], [0, 0, 1, 1], [], []>} : vector<16x3072xbf16>, vector<3072x128xbf16>, vector<16x128xf32> -> vector<16x128xf32>
    %9 = arith.addf %3, %8 : vector<16x128xf32>
    %c0_6 = arith.constant 0 : index
    %c0_7 = arith.constant 0 : index
    %10 = vector.load %arg4[%c0_6, %c0_7] : memref<16x128xf32, #tpu.memory_space<vmem>>, vector<16x128xf32>
    tpu.vector_store %arg4[%c0_6, %c0_7], %9 {strides = array<i32>} : memref<16x128xf32, #tpu.memory_space<vmem>>, vector<16x128xf32>,
    %c0_i32_8 = arith.constant 0 : i32
    %11 = arith.cmpi eq, %arg1, %c0_i32_8 : i32
    %12 = arith.extui %11 : i1 to i32
    %c0_i32_9 = arith.constant 0 : i32
    %13 = arith.cmpi ne, %12, %c0_i32_9 : i32
    scf.if %13 {
      %c0_10 = arith.constant 0 : index
      %c0_11 = arith.constant 0 : index
      %14 = vector.load %arg4[%c0_10, %c0_11] : memref<16x128xf32, #tpu.memory_space<vmem>>, vector<16x128xf32>
      %15 = arith.mulf %14, %14 : vector<16x128xf32>
      %cst_12 = arith.constant dense<0.000000e+00> : vector<16xf32>
      %16 = vector.multi_reduction <add>, %15, %cst_12 [1] : vector<16x128xf32> to vector<16xf32>
      %17 = vector.shape_cast %16 : vector<16xf32> to vector<16x1xf32>
      %cst_13 = arith.constant 9.99999997E-7 : f32
      %18 = vector.broadcast %cst_13 : f32 to vector<16x1xf32>
      %19 = arith.addf %17, %18 : vector<16x1xf32>
      %20 = math.rsqrt %19 : vector<16x1xf32>
      %21 = vector.broadcast %20 : vector<16x1xf32> to vector<16x128xf32>
      %22 = arith.mulf %14, %21 : vector<16x128xf32>
      %c0_14 = arith.constant 0 : index
      %c0_15 = arith.constant 0 : index
      %23 = vector.load %arg4[%c0_14, %c0_15] : memref<16x128xf32, #tpu.memory_space<vmem>>, vector<16x128xf32>
      tpu.vector_store %arg4[%c0_14, %c0_15], %22 {strides = array<i32>} : memref<16x128xf32, #tpu.memory_space<vmem>>, vector<16x128xf32>,
    } else {
    }
    return
  }
  func.func @transform_0(%arg0: i32, %arg1: i32) -> (i32, i32, i32) {
    %c0_i32 = arith.constant 0 : i32
    %c0_i32_0 = arith.constant 0 : i32
    %c0_i32_1 = arith.constant 0 : i32
    %c0_i32_2 = arith.constant 0 : i32
    return %c0_i32, %c0_i32_0, %c0_i32_1 : i32, i32, i32
  }
  func.func @transform_1(%arg0: i32, %arg1: i32) -> (i32, i32) {
    %c0_i32 = arith.constant 0 : i32
    return %arg1, %arg0 : i32, i32
  }
  func.func @transform_2(%arg0: i32, %arg1: i32) -> (i32, i32) {
    %c0_i32 = arith.constant 0 : i32
    %c0_i32_0 = arith.constant 0 : i32
    return %c0_i32, %arg0 : i32, i32
  }
}

module attributes {stable_mosaic.version = 11 : i64} {
  func.func @_dino_fused_kernel(%arg0: i32, %arg1: memref<16x64xf32, #tpu.memory_space<vmem>>, %arg2: memref<64x128xbf16, #tpu.memory_space<vmem>>, %arg3: memref<128x128xbf16, #tpu.memory_space<vmem>>, %arg4: memref<128x128xf32, #tpu.memory_space<vmem>>, %arg5: memref<1x128xf32, #tpu.memory_space<vmem>>, %arg6: memref<16x128xf32, #tpu.memory_space<vmem>>, %arg7: memref<16x128xf32, #tpu.memory_space<vmem>>) attributes {dimension_semantics = [#tpu.dimension_semantics<parallel>], iteration_bounds = array<i64: 1>, scalar_prefetch = 0 : i64, scratch_operands = 0 : i64, tpu.core_type = #tpu.core_type<tc>, window_params = [{transform_indices = @transform_0, window_bounds = array<i64: 16, 64>}, {pipeline_mode = #tpu.pipeline_mode<synchronous>, transform_indices = @transform_1, window_bounds = array<i64: 64, 128>}, {pipeline_mode = #tpu.pipeline_mode<synchronous>, transform_indices = @transform_2, window_bounds = array<i64: 128, 128>}, {pipeline_mode = #tpu.pipeline_mode<synchronous>, transform_indices = @transform_3, window_bounds = array<i64: 128, 128>}, {pipeline_mode = #tpu.pipeline_mode<synchronous>, transform_indices = @transform_4, window_bounds = array<i64: 1, 128>}, {transform_indices = @transform_5, window_bounds = array<i64: 16, 128>}, {transform_indices = @transform_6, window_bounds = array<i64: 16, 128>}]} {
    %c0 = arith.constant 0 : index
    %c0_0 = arith.constant 0 : index
    %0 = vector.load %arg1[%c0, %c0_0] : memref<16x64xf32, #tpu.memory_space<vmem>>, vector<16x64xf32>
    %cst = arith.constant dense<0.000000e+00> : vector<16xf32>
    %1 = vector.multi_reduction <add>, %0, %cst [1] : vector<16x64xf32> to vector<16xf32>
    %2 = vector.shape_cast %1 : vector<16xf32> to vector<16x1xf32>
    %cst_1 = arith.constant 9.99999997E-7 : f32
    %3 = vector.broadcast %cst_1 : f32 to vector<16x1xf32>
    %4 = arith.maximumf %2, %3 : vector<16x1xf32>
    %5 = arith.truncf %0 : vector<16x64xf32> to vector<16x64xbf16>
    %c0_2 = arith.constant 0 : index
    %c0_3 = arith.constant 0 : index
    %6 = vector.load %arg2[%c0_2, %c0_3] : memref<64x128xbf16, #tpu.memory_space<vmem>>, vector<64x128xbf16>
    %cst_4 = arith.constant dense<0.000000e+00> : vector<16x128xf32>
    %7 = tpu.matmul %5, %6, %cst_4 {dimension_numbers = #tpu.dot_dimension_numbers<[1], [0], [0], [1], [0, 0, 1, 1], [], []>} : vector<16x64xbf16>, vector<64x128xbf16>, vector<16x128xf32> -> vector<16x128xf32>
    %8 = arith.truncf %7 : vector<16x128xf32> to vector<16x128xbf16>
    %c0_5 = arith.constant 0 : index
    %c0_6 = arith.constant 0 : index
    %9 = vector.load %arg3[%c0_5, %c0_6] : memref<128x128xbf16, #tpu.memory_space<vmem>>, vector<128x128xbf16>
    %cst_7 = arith.constant dense<0.000000e+00> : vector<16x128xf32>
    %10 = tpu.matmul %8, %9, %cst_7 {dimension_numbers = #tpu.dot_dimension_numbers<[1], [0], [0], [1], [0, 0, 1, 1], [], []>} : vector<16x128xbf16>, vector<128x128xbf16>, vector<16x128xf32> -> vector<16x128xf32>
    %11 = vector.broadcast %4 : vector<16x1xf32> to vector<16x128xf32>
    %12 = arith.divf %10, %11 : vector<16x128xf32>
    %c0_8 = arith.constant 0 : index
    %c0_9 = arith.constant 0 : index
    %13 = vector.load %arg6[%c0_8, %c0_9] : memref<16x128xf32, #tpu.memory_space<vmem>>, vector<16x128xf32>
    tpu.vector_store %arg6[%c0_8, %c0_9], %12 {strides = array<i32>} : memref<16x128xf32, #tpu.memory_space<vmem>>, vector<16x128xf32>,
    %c0_10 = arith.constant 0 : index
    %c0_11 = arith.constant 0 : index
    %14 = vector.load %arg4[%c0_10, %c0_11] : memref<128x128xf32, #tpu.memory_space<vmem>>, vector<128x128xf32>
    %cst_12 = arith.constant dense<0.000000e+00> : vector<16x128xf32>
    %15 = tpu.matmul %12, %14, %cst_12 {dimension_numbers = #tpu.dot_dimension_numbers<[1], [0], [0], [1], [0, 0, 1, 1], [], []>} : vector<16x128xf32>, vector<128x128xf32>, vector<16x128xf32> -> vector<16x128xf32>
    %c0_13 = arith.constant 0 : index
    %c0_14 = arith.constant 0 : index
    %16 = vector.load %arg5[%c0_13, %c0_14] : memref<1x128xf32, #tpu.memory_space<vmem>>, vector<1x128xf32>
    %17 = vector.broadcast %16 : vector<1x128xf32> to vector<16x128xf32>
    %18 = arith.addf %15, %17 : vector<16x128xf32>
    %19 = arith.negf %18 : vector<16x128xf32>
    %20 = math.exp %19 : vector<16x128xf32>
    %cst_15 = arith.constant 1.000000e+00 : f32
    %21 = vector.broadcast %cst_15 : f32 to vector<16x128xf32>
    %22 = arith.addf %21, %20 : vector<16x128xf32>
    %23 = arith.divf %21, %22 : vector<16x128xf32>
    %c0_16 = arith.constant 0 : index
    %c0_17 = arith.constant 0 : index
    %24 = vector.load %arg7[%c0_16, %c0_17] : memref<16x128xf32, #tpu.memory_space<vmem>>, vector<16x128xf32>
    tpu.vector_store %arg7[%c0_16, %c0_17], %23 {strides = array<i32>} : memref<16x128xf32, #tpu.memory_space<vmem>>, vector<16x128xf32>,
    return
  }
  func.func @transform_0(%arg0: i32) -> (i32, i32) {
    %c0_i32 = arith.constant 0 : i32
    %c0_i32_0 = arith.constant 0 : i32
    return %arg0, %c0_i32 : i32, i32
  }
  func.func @transform_1(%arg0: i32) -> (i32, i32) {
    %c0_i32 = arith.constant 0 : i32
    %c0_i32_0 = arith.constant 0 : i32
    %c0_i32_1 = arith.constant 0 : i32
    return %c0_i32, %c0_i32_0 : i32, i32
  }
  func.func @transform_2(%arg0: i32) -> (i32, i32) {
    %c0_i32 = arith.constant 0 : i32
    %c0_i32_0 = arith.constant 0 : i32
    %c0_i32_1 = arith.constant 0 : i32
    return %c0_i32, %c0_i32_0 : i32, i32
  }
  func.func @transform_3(%arg0: i32) -> (i32, i32) {
    %c0_i32 = arith.constant 0 : i32
    %c0_i32_0 = arith.constant 0 : i32
    %c0_i32_1 = arith.constant 0 : i32
    return %c0_i32, %c0_i32_0 : i32, i32
  }
  func.func @transform_4(%arg0: i32) -> (i32, i32) {
    %c0_i32 = arith.constant 0 : i32
    %c0_i32_0 = arith.constant 0 : i32
    %c0_i32_1 = arith.constant 0 : i32
    return %c0_i32, %c0_i32_0 : i32, i32
  }
  func.func @transform_5(%arg0: i32) -> (i32, i32) {
    %c0_i32 = arith.constant 0 : i32
    %c0_i32_0 = arith.constant 0 : i32
    return %arg0, %c0_i32 : i32, i32
  }
  func.func @transform_6(%arg0: i32) -> (i32, i32) {
    %c0_i32 = arith.constant 0 : i32
    %c0_i32_0 = arith.constant 0 : i32
    return %arg0, %c0_i32 : i32, i32
  }
}

</mosaic_0001>

<bundles_post_ra>
// kernel: feature_extractor_forward.3
= control target key start
LH: loop header
LB: loop body
LE: loop exit
PB: predicated region body
PF: predicated region fallthrough
CT: control target
= control target key end

     0   :  { %s3568_s1 = inlined_call_operand.vmem [shape: bf16[3072,128], index: 1, kind: input, shape index: {}]   ;;  %s3569_s0 = inlined_call_operand.vmem [shape: bf16[1,16,3072], index: 0, kind: input, shape index: {}]   ;;  %s3570_s2 = inlined_call_operand.vmem [shape: f32[16,128], index: 2, kind: output, shape index: {}]  }
   0x1   :  { %v2703_v0 = vld [vmem:[%s3568_s1 + $0x40] sm:$0xff]   ;;  %v2707_v4 = vld [vmem:[%s3568_s1 + $0x48] sm:$0xff]   ;;  %v2711_v8 = vld [vmem:[%s3568_s1 + $0x50] sm:$0xff]  }
   0x2   :  { %v2704_v1 = vld [vmem:[%s3568_s1 + $0xc0] sm:$0xff]   ;;  %2438 = vmatprep.subr.bf16.mxu0 %v2703_v0  ;;  %v2708_v5 = vld [vmem:[%s3568_s1 + $0xc8] sm:$0xff]   ;;  %v2712_v9 = vld [vmem:[%s3568_s1 + $0xd0] sm:$0xff]  }
   0x3   :  { %v2705_v2 = vld [vmem:[%s3568_s1] sm:$0xff]   ;;  %2460 = vmatprep.subr.bf16.mxu1 %v2704_v1  ;;  %v2709_v6 = vld [vmem:[%s3568_s1 + $0x8] sm:$0xff]   ;;  %v2713_v10 = vld [vmem:[%s3568_s1 + $0x10] sm:$0xff]  }
   0x4   :  { %v2706_v3 = vld [vmem:[%s3568_s1 + $0x80] sm:$0xff]   ;;  %2439 = vmatpush3.bf16.msra.mxu0 %v2705_v2  ;;  %v2710_v7 = vld [vmem:[%s3568_s1 + $0x88] sm:$0xff]   ;;  %v2714_v11 = vld [vmem:[%s3568_s1 + $0x90] sm:$0xff]  }
   0x5   :  { %2461 = vmatpush3.bf16.msra.mxu1 %v2706_v3  ;;  %2440 = vmatprep.subr.bf16.mxu0 %v2707_v4  ;;  %v2715_v12 = vld [vmem:[%s3568_s1 + $0x58] sm:$0xff]   ;;  %v2719_v16 = vld [vmem:[%s3568_s1 + $0x60] sm:$0xff]   ;;  %v2723_v20 = vld [vmem:[%s3568_s1 + $0x68] sm:$0xff]  }
   0x6   :  { %2462 = vmatprep.subr.bf16.mxu1 %v2708_v5  ;;  %v2716_v13 = vld [vmem:[%s3568_s1 + $0xd8] sm:$0xff]   ;;  %v2720_v17 = vld [vmem:[%s3568_s1 + $0xe0] sm:$0xff]   ;;  %v2724_v21 = vld [vmem:[%s3568_s1 + $0xe8] sm:$0xff]  }
   0x7   :  { %v2717_v14 = vld [vmem:[%s3568_s1 + $0x18] sm:$0xff]   ;;  %v2721_v18 = vld [vmem:[%s3568_s1 + $0x20] sm:$0xff]   ;;  %v2725_v22 = vld [vmem:[%s3568_s1 + $0x28] sm:$0xff]  }
   0x8   :  { %2441 = vmatpush3.bf16.msra.mxu0 %v2709_v6  ;;  %v2718_v15 = vld [vmem:[%s3568_s1 + $0x98] sm:$0xff]   ;;  %v2722_v19 = vld [vmem:[%s3568_s1 + $0xa0] sm:$0xff]   ;;  %v2726_v23 = vld [vmem:[%s3568_s1 + $0xa8] sm:$0xff]  }
   0x9   :  { %2463 = vmatpush3.bf16.msra.mxu1 %v2710_v7  ;;  %2442 = vmatprep.subr.bf16.mxu0 %v2711_v8  ;;  %v2727_v24 = vld [vmem:[%s3568_s1 + $0x70] sm:$0xff]   ;;  %v2731_v28 = vld [vmem:[%s3568_s1 + $0x78] sm:$0xff]   ;;  %v23_v32 = vld [vmem:[%s3569_s0] sm:$0xff] }
   0xa   :  { %2464 = vmatprep.subr.bf16.mxu1 %v2712_v9  ;;  %v2728_v25 = vld [vmem:[%s3568_s1 + $0xf0] sm:$0xff]   ;;  %v2732_v29 = vld [vmem:[%s3568_s1 + $0xf8] sm:$0xff]   ;;  %v35_v33 = vld [vmem:[%s3569_s0 + $0x60] sm:$0xff] }
   0xb   :  { %v2729_v26 = vld [vmem:[%s3568_s1 + $0x30] sm:$0xff]   ;;  %v2733_v30 = vld [vmem:[%s3568_s1 + $0x38] sm:$0xff]   ;;  %v24_v34 = vld [vmem:[%s3569_s0 + $0x8] sm:$0xff]  ;;  %v2222_v35 = vcombine.low %v23_v32, %v35_v33  ;;  %v2223_v36 = vcombine.high %v23_v32, %v35_v33 }
   0xc   :  { %2443 = vmatpush3.bf16.msra.mxu0 %v2713_v10  ;;  %v2730_v27 = vld [vmem:[%s3568_s1 + $0xb0] sm:$0xff]   ;;  %v2734_v31 = vld [vmem:[%s3568_s1 + $0xb8] sm:$0xff]   ;;  %v36_v37 = vld [vmem:[%s3569_s0 + $0x68] sm:$0xff] }
   0xd   :  { %2465 = vmatpush3.bf16.msra.mxu1 %v2714_v11  ;;  %2444 = vmatprep.subr.bf16.mxu0 %v2715_v12  ;;  %v2224_v38 = vcombine.low %v24_v34, %v36_v37  ;;  %v2225_v39 = vcombine.high %v24_v34, %v36_v37  ;;  %v2735_v40 = vld [vmem:[%s3568_s1 + $0x140] sm:$0xff]   ;;  %v2739_v44 = vld [vmem:[%s3568_s1 + $0x148] sm:$0xff]   ;;  %v2743_v48 = vld [vmem:[%s3568_s1 + $0x150] sm:$0xff]  }
   0xe   :  { %2466 = vmatprep.subr.bf16.mxu1 %v2716_v13  ;;  %1735 = vmatprep.mubr.bf16.mxu0 %v2223_v36  ;;  %v2736_v41 = vld [vmem:[%s3568_s1 + $0x1c0] sm:$0xff]   ;;  %v2740_v45 = vld [vmem:[%s3568_s1 + $0x1c8] sm:$0xff]   ;;  %v2744_v49 = vld [vmem:[%s3568_s1 + $0x1d0] sm:$0xff]  }
   0xf   :  { %1776 = vmatprep.mubr.bf16.mxu1 %v2225_v39  ;;  %v2737_v42 = vld [vmem:[%s3568_s1 + $0x100] sm:$0xff]   ;;  %v2741_v46 = vld [vmem:[%s3568_s1 + $0x108] sm:$0xff]   ;;  %v2745_v50 = vld [vmem:[%s3568_s1 + $0x110] sm:$0xff]  }
  0x10   :  { %2445 = vmatpush3.bf16.msra.mxu0 %v2717_v14  ;;  %v2738_v43 = vld [vmem:[%s3568_s1 + $0x180] sm:$0xff]   ;;  %v2742_v47 = vld [vmem:[%s3568_s1 + $0x188] sm:$0xff]   ;;  %v2746_v51 = vld [vmem:[%s3568_s1 + $0x190] sm:$0xff]  }
  0x11   :  { %2467 = vmatpush3.bf16.msra.mxu1 %v2718_v15  ;;  %2446 = vmatprep.subr.bf16.mxu0 %v2719_v16  ;;  %v2747_v52 = vld [vmem:[%s3568_s1 + $0x158] sm:$0xff]   ;;  %v2751_v56 = vld [vmem:[%s3568_s1 + $0x160] sm:$0xff]   ;;  %v2755_v60 = vld [vmem:[%s3568_s1 + $0x168] sm:$0xff]  }
  0x12   :  { %2468 = vmatprep.subr.bf16.mxu1 %v2720_v17  ;;  %v2748_v53 = vld [vmem:[%s3568_s1 + $0x1d8] sm:$0xff]   ;;  %v2752_v57 = vld [vmem:[%s3568_s1 + $0x1e0] sm:$0xff]   ;;  %v2756_v61 = vld [vmem:[%s3568_s1 + $0x1e8] sm:$0xff]  }
  0x13   :  { %v2749_v54 = vld [vmem:[%s3568_s1 + $0x118] sm:$0xff]   ;;  %v2753_v58 = vld [vmem:[%s3568_s1 + $0x120] sm:$0xff]   ;;  %v2757_v62 = vld [vmem:[%s3568_s1 + $0x128] sm:$0xff]  }
  0x14   :  { %2447 = vmatpush3.bf16.msra.mxu0 %v2721_v18  ;;  %v2750_v55 = vld [vmem:[%s3568_s1 + $0x198] sm:$0xff]   ;;  %v2754_v59 = vld [vmem:[%s3568_s1 + $0x1a0] sm:$0xff]   ;;  %v2758_v63 = vld [vmem:[%s3568_s1 + $0x1a8] sm:$0xff]  }
  0x15   :  { %2469 = vmatpush3.bf16.msra.mxu1 %v2722_v19  ;;  %2448 = vmatprep.subr.bf16.mxu0 %v2723_v20  ;;  %v2759_v0 = vld [vmem:[%s3568_s1 + $0x170] sm:$0xff]   ;;  %v2763_v4 = vld [vmem:[%s3568_s1 + $0x178] sm:$0xff]   ;;  %v2767_v16 = vld [vmem:[%s3568_s1 + $0x240] sm:$0xff]  }
  0x16   :  { %2470 = vmatprep.subr.bf16.mxu1 %v2724_v21  ;;  %v2760_v1 = vld [vmem:[%s3568_s1 + $0x1f0] sm:$0xff]   ;;  %v2764_v5 = vld [vmem:[%s3568_s1 + $0x1f8] sm:$0xff]   ;;  %v2768_v17 = vld [vmem:[%s3568_s1 + $0x2c0] sm:$0xff]  }
  0x17   :  { %v2761_v2 = vld [vmem:[%s3568_s1 + $0x130] sm:$0xff]   ;;  %v2765_v6 = vld [vmem:[%s3568_s1 + $0x138] sm:$0xff]   ;;  %v2769_v18 = vld [vmem:[%s3568_s1 + $0x200] sm:$0xff]  }
  0x18   :  { %2449 = vmatpush3.bf16.msra.mxu0 %v2725_v22  ;;  %v2762_v3 = vld [vmem:[%s3568_s1 + $0x1b0] sm:$0xff]   ;;  %v2766_v7 = vld [vmem:[%s3568_s1 + $0x1b8] sm:$0xff]   ;;  %v2770_v19 = vld [vmem:[%s3568_s1 + $0x280] sm:$0xff]  }
  0x19   :  { %2471 = vmatpush3.bf16.msra.mxu1 %v2726_v23  ;;  %2450 = vmatprep.subr.bf16.mxu0 %v2727_v24  ;;  %v25_v8 = vld [vmem:[%s3569_s0 + $0x10] sm:$0xff]  ;;  %v26_v12 = vld [vmem:[%s3569_s0 + $0x18] sm:$0xff]  ;;  %v2771_v20 = vld [vmem:[%s3568_s1 + $0x248] sm:$0xff]  }
  0x1a   :  { %2472 = vmatprep.subr.bf16.mxu1 %v2728_v25  ;;  %v37_v9 = vld [vmem:[%s3569_s0 + $0x70] sm:$0xff]  ;;  %v38_v13 = vld [vmem:[%s3569_s0 + $0x78] sm:$0xff]  ;;  %v2772_v21 = vld [vmem:[%s3568_s1 + $0x2c8] sm:$0xff]  }
  0x1b   :  { %v2226_v10 = vcombine.low %v25_v8, %v37_v9  ;;  %v2227_v11 = vcombine.high %v25_v8, %v37_v9  ;;  %v2228_v14 = vcombine.low %v26_v12, %v38_v13  ;;  %v2229_v15 = vcombine.high %v26_v12, %v38_v13  ;;  %v2773_v22 = vld [vmem:[%s3568_s1 + $0x208] sm:$0xff]   ;;  %v2775_v24 = vld [vmem:[%s3568_s1 + $0x250] sm:$0xff]   ;;  %v2783_v32 = vld [vmem:[%s3568_s1 + $0x260] sm:$0xff]  }
  0x1c   :  { %2451 = vmatpush3.bf16.msra.mxu0 %v2729_v26  ;;  %v2774_v23 = vld [vmem:[%s3568_s1 + $0x288] sm:$0xff]   ;;  %v2776_v25 = vld [vmem:[%s3568_s1 + $0x2d0] sm:$0xff]   ;;  %v2784_v33 = vld [vmem:[%s3568_s1 + $0x2e0] sm:$0xff]  }
  0x1d   :  { %2473 = vmatpush3.bf16.msra.mxu1 %v2730_v27  ;;  %2452 = vmatprep.subr.bf16.mxu0 %v2731_v28  ;;  %v2777_v26 = vld [vmem:[%s3568_s1 + $0x210] sm:$0xff]   ;;  %v2779_v28 = vld [vmem:[%s3568_s1 + $0x258] sm:$0xff]   ;;  %v2785_v34 = vld [vmem:[%s3568_s1 + $0x220] sm:$0xff]  }
  0x1e   :  { %2474 = vmatprep.subr.bf16.mxu1 %v2732_v29  ;;  %v2778_v27 = vld [vmem:[%s3568_s1 + $0x290] sm:$0xff]   ;;  %v2780_v29 = vld [vmem:[%s3568_s1 + $0x2d8] sm:$0xff]   ;;  %v2787_v36 = vld [vmem:[%s3568_s1 + $0x268] sm:$0xff]  }
  0x1f   :  { %v2788_v37 = vld [vmem:[%s3568_s1 + $0x2e8] sm:$0xff]   ;;  %v2815_v8 = vld [vmem:[%s3568_s1 + $0x360] sm:$0xff]  }
  0x20   :  { %2453 = vmatpush3.bf16.msra.mxu0 %v2733_v30  ;;  %v2781_v30 = vld [vmem:[%s3568_s1 + $0x218] sm:$0xff]   ;;  %v2790_v39 = vld [vmem:[%s3568_s1 + $0x2a8] sm:$0xff]   ;;  %v2816_v9 = vld [vmem:[%s3568_s1 + $0x3e0] sm:$0xff]  }
  0x21   :  { %2475 = vmatpush3.bf16.msra.mxu1 %v2734_v31  ;;  %2482 = vmatprep.subr.bf16.mxu0 %v2735_v40  ;;  %v2782_v31 = vld [vmem:[%s3568_s1 + $0x298] sm:$0xff]   ;;  %v2791_v40 = vld [vmem:[%s3568_s1 + $0x270] sm:$0xff]   ;;  %v2819_v12 = vld [vmem:[%s3568_s1 + $0x368] sm:$0xff]  }
  0x22   :  { %2504 = vmatprep.subr.bf16.mxu1 %v2736_v41  ;;  %v2792_v41 = vld [vmem:[%s3568_s1 + $0x2f0] sm:$0xff]   ;;  %v2820_v13 = vld [vmem:[%s3568_s1 + $0x3e8] sm:$0xff]  }
  0x23   :  { %1736 = vmatmul.mubr.bf16.vlgmr.msra.gmra.mrb[0].mxu0 %v2222_v35  ;;  %v2786_v35 = vld [vmem:[%s3568_s1 + $0x2a0] sm:$0xff]  }
  0x24   :  { %1777 = vmatmul.mubr.bf16.vlgmr.msra.gmra.mrb[0].mxu1 %v2224_v38  ;;  %2483 = vmatpush3.bf16.msra.mxu0 %v2737_v42  ;;  %v2789_v38 = vld [vmem:[%s3568_s1 + $0x228] sm:$0xff]   ;;  %v2793_v42 = vld [vmem:[%s3568_s1 + $0x230] sm:$0xff]  }
  0x25   :  { %2505 = vmatpush3.bf16.msra.mxu1 %v2738_v43  ;;  %2484 = vmatprep.subr.bf16.mxu0 %v2739_v44  ;;  %v2794_v43 = vld [vmem:[%s3568_s1 + $0x2b0] sm:$0xff]   ;;  %v2795_v44 = vld [vmem:[%s3568_s1 + $0x278] sm:$0xff]  }
  0x26   :  { %2506 = vmatprep.subr.bf16.mxu1 %v2740_v45  ;;  %1817 = vmatprep.mubr.bf16.mxu0 %v2227_v11  ;;  %v2796_v45 = vld [vmem:[%s3568_s1 + $0x2f8] sm:$0xff]   ;;  %v2818_v11 = vld [vmem:[%s3568_s1 + $0x3a0] sm:$0xff]  }
  0x27   :  { %1858 = vmatprep.mubr.bf16.mxu1 %v2229_v15  ;;  %v2822_v15 = vld [vmem:[%s3568_s1 + $0x3a8] sm:$0xff]  }
  0x28   :  { %2485 = vmatpush3.bf16.msra.mxu0 %v2741_v46  ;;  %v2797_v46 = vld [vmem:[%s3568_s1 + $0x238] sm:$0xff]  }
  0x29   :  { %2507 = vmatpush3.bf16.msra.mxu1 %v2742_v47  ;;  %2486 = vmatprep.subr.bf16.mxu0 %v2743_v48  ;;  %v2798_v47 = vld [vmem:[%s3568_s1 + $0x2b8] sm:$0xff]   ;;  %v27_v48 = vld [vmem:[%s3569_s0 + $0x20] sm:$0xff] }
  0x2a   :  { %2508 = vmatprep.subr.bf16.mxu1 %v2744_v49  ;;  %v39_v49 = vld [vmem:[%s3569_s0 + $0x80] sm:$0xff] }
  0x2c   :  { %2487 = vmatpush3.bf16.msra.mxu0 %v2745_v50  ;;  %v28_v50 = vld [vmem:[%s3569_s0 + $0x28] sm:$0xff] }
  0x2d   :  { %2509 = vmatpush3.bf16.msra.mxu1 %v2746_v51  ;;  %2488 = vmatprep.subr.bf16.mxu0 %v2747_v52  ;;  %v40_v51 = vld [vmem:[%s3569_s0 + $0x88] sm:$0xff]  ;;  %v2230_v52 = vcombine.low %v27_v48, %v39_v49 }
  0x2e   :  { %2510 = vmatprep.subr.bf16.mxu1 %v2748_v53  ;;  %v2231_v53 = vcombine.high %v27_v48, %v39_v49  ;;  %v2847_v48 = vld [vmem:[%s3568_s1 + $0x460] sm:$0xff]  }
  0x2f   :  { %v2848_v49 = vld [vmem:[%s3568_s1 + $0x4e0] sm:$0xff]  }
  0x30   :  { %2489 = vmatpush3.bf16.msra.mxu0 %v2749_v54  ;;  %v2232_v54 = vcombine.low %v28_v50, %v40_v51 }
  0x31   :  { %2511 = vmatpush3.bf16.msra.mxu1 %v2750_v55  ;;  %2490 = vmatprep.subr.bf16.mxu0 %v2751_v56  ;;  %v2233_v55 = vcombine.high %v28_v50, %v40_v51  ;;  %v2799_v56 = vld [vmem:[%s3568_s1 + $0x340] sm:$0xff]  }
  0x32   :  { %2512 = vmatprep.subr.bf16.mxu1 %v2752_v57  ;;  %v2800_v57 = vld [vmem:[%s3568_s1 + $0x3c0] sm:$0xff]  }
  0x33   :  { %v2849_v50 = vld [vmem:[%s3568_s1 + $0x420] sm:$0xff]  }
  0x34   :  { %2491 = vmatpush3.bf16.msra.mxu0 %v2753_v58  ;;  %v2801_v58 = vld [vmem:[%s3568_s1 + $0x300] sm:$0xff]  }
  0x35   :  { %2513 = vmatpush3.bf16.msra.mxu1 %v2754_v59  ;;  %2492 = vmatprep.subr.bf16.mxu0 %v2755_v60  ;;  %v2802_v59 = vld [vmem:[%s3568_s1 + $0x380] sm:$0xff]   ;;  %v2803_v60 = vld [vmem:[%s3568_s1 + $0x348] sm:$0xff]  }
  0x36   :  { %2514 = vmatprep.subr.bf16.mxu1 %v2756_v61  ;;  %v2804_v61 = vld [vmem:[%s3568_s1 + $0x3c8] sm:$0xff]   ;;  %v2850_v51 = vld [vmem:[%s3568_s1 + $0x4a0] sm:$0xff]  }
  0x38   :  { %2493 = vmatpush3.bf16.msra.mxu0 %v2757_v62  ;;  %v2805_v62 = vld [vmem:[%s3568_s1 + $0x308] sm:$0xff]  }
  0x39   :  { %2515 = vmatpush3.bf16.msra.mxu1 %v2758_v63  ;;  %2494 = vmatprep.subr.bf16.mxu0 %v2759_v0  ;;  %v2806_v63 = vld [vmem:[%s3568_s1 + $0x388] sm:$0xff]   ;;  %v2807_v0 = vld [vmem:[%s3568_s1 + $0x350] sm:$0xff]  }
  0x3a   :  { %2516 = vmatprep.subr.bf16.mxu1 %v2760_v1  ;;  %v2808_v1 = vld [vmem:[%s3568_s1 + $0x3d0] sm:$0xff]  }
  0x3c   :  { %2495 = vmatpush3.bf16.msra.mxu0 %v2761_v2  ;;  %v2809_v2 = vld [vmem:[%s3568_s1 + $0x310] sm:$0xff]  }
  0x3d   :  { %2517 = vmatpush3.bf16.msra.mxu1 %v2762_v3  ;;  %2496 = vmatprep.subr.bf16.mxu0 %v2763_v4  ;;  %v2810_v3 = vld [vmem:[%s3568_s1 + $0x390] sm:$0xff]   ;;  %v2811_v4 = vld [vmem:[%s3568_s1 + $0x358] sm:$0xff]  }
  0x3e   :  { %2518 = vmatprep.subr.bf16.mxu1 %v2764_v5  ;;  %v2812_v5 = vld [vmem:[%s3568_s1 + $0x3d8] sm:$0xff]  }
  0x40   :  { %2497 = vmatpush3.bf16.msra.mxu0 %v2765_v6  ;;  %v2813_v6 = vld [vmem:[%s3568_s1 + $0x318] sm:$0xff]  }
  0x41   :  { %2519 = vmatpush3.bf16.msra.mxu1 %v2766_v7  ;;  %2526 = vmatprep.subr.bf16.mxu0 %v2767_v16  ;;  %v2814_v7 = vld [vmem:[%s3568_s1 + $0x398] sm:$0xff]   ;;  %v2823_v16 = vld [vmem:[%s3568_s1 + $0x370] sm:$0xff]  }
  0x42   :  { %2548 = vmatprep.subr.bf16.mxu1 %v2768_v17  ;;  %v2824_v17 = vld [vmem:[%s3568_s1 + $0x3f0] sm:$0xff]  }
  0x43   :  { %1818 = vmatmul.mubr.bf16.vlgmr.msra.gmra.mrb[4].mxu0 %v2226_v10  ;;  %v2817_v10 = vld [vmem:[%s3568_s1 + $0x320] sm:$0xff]  }
  0x44   :  { %1859 = vmatmul.mubr.bf16.vlgmr.msra.gmra.mrb[4].mxu1 %v2228_v14  ;;  %2527 = vmatpush3.bf16.msra.mxu0 %v2769_v18  ;;  %v2821_v14 = vld [vmem:[%s3568_s1 + $0x328] sm:$0xff]   ;;  %v2825_v18 = vld [vmem:[%s3568_s1 + $0x330] sm:$0xff]  }
  0x45   :  { %2549 = vmatpush3.bf16.msra.mxu1 %v2770_v19  ;;  %2528 = vmatprep.subr.bf16.mxu0 %v2771_v20  ;;  %v2826_v19 = vld [vmem:[%s3568_s1 + $0x3b0] sm:$0xff]   ;;  %v2827_v20 = vld [vmem:[%s3568_s1 + $0x378] sm:$0xff]  }
  0x46   :  { %2550 = vmatprep.subr.bf16.mxu1 %v2772_v21  ;;  %1899 = vmatprep.mubr.bf16.mxu0 %v2231_v53  ;;  %v2828_v21 = vld [vmem:[%s3568_s1 + $0x3f8] sm:$0xff]   ;;  %v2852_v53 = vld [vmem:[%s3568_s1 + $0x4e8] sm:$0xff]  }
  0x47   :  { %1940 = vmatprep.mubr.bf16.mxu1 %v2233_v55  ;;  %v2854_v55 = vld [vmem:[%s3568_s1 + $0x4a8] sm:$0xff]  }
  0x48   :  { %2529 = vmatpush3.bf16.msra.mxu0 %v2773_v22  ;;  %v2829_v22 = vld [vmem:[%s3568_s1 + $0x338] sm:$0xff]  }
  0x49   :  { %2551 = vmatpush3.bf16.msra.mxu1 %v2774_v23  ;;  %2530 = vmatprep.subr.bf16.mxu0 %v2775_v24  ;;  %v2830_v23 = vld [vmem:[%s3568_s1 + $0x3b8] sm:$0xff]   ;;  %v29_v24 = vld [vmem:[%s3569_s0 + $0x30] sm:$0xff] }
  0x4a   :  { %2552 = vmatprep.subr.bf16.mxu1 %v2776_v25  ;;  %v41_v25 = vld [vmem:[%s3569_s0 + $0x90] sm:$0xff] }
  0x4c   :  { %2531 = vmatpush3.bf16.msra.mxu0 %v2777_v26  ;;  %v30_v26 = vld [vmem:[%s3569_s0 + $0x38] sm:$0xff] }
  0x4d   :  { %2553 = vmatpush3.bf16.msra.mxu1 %v2778_v27  ;;  %2532 = vmatprep.subr.bf16.mxu0 %v2779_v28  ;;  %v2234_v27 = vcombine.low %v29_v24, %v41_v25  ;;  %v2235_v28 = vcombine.high %v29_v24, %v41_v25  ;;  %v2879_v24 = vld [vmem:[%s3568_s1 + $0x560] sm:$0xff]  }
  0x4e   :  { %2554 = vmatprep.subr.bf16.mxu1 %v2780_v29  ;;  %v42_v29 = vld [vmem:[%s3569_s0 + $0x98] sm:$0xff]  ;;  %v2880_v25 = vld [vmem:[%s3568_s1 + $0x5e0] sm:$0xff]  }
  0x50   :  { %2533 = vmatpush3.bf16.msra.mxu0 %v2781_v30  ;;  %v2236_v30 = vcombine.low %v30_v26, %v42_v29 }
  0x51   :  { %2555 = vmatpush3.bf16.msra.mxu1 %v2782_v31  ;;  %2534 = vmatprep.subr.bf16.mxu0 %v2783_v32  ;;  %v2237_v31 = vcombine.high %v30_v26, %v42_v29  ;;  %v2831_v32 = vld [vmem:[%s3568_s1 + $0x440] sm:$0xff]   ;;  %v2884_v29 = vld [vmem:[%s3568_s1 + $0x5e8] sm:$0xff]  }
  0x52   :  { %2556 = vmatprep.subr.bf16.mxu1 %v2784_v33  ;;  %v2832_v33 = vld [vmem:[%s3568_s1 + $0x4c0] sm:$0xff]  }
  0x53   :  { %v2881_v26 = vld [vmem:[%s3568_s1 + $0x520] sm:$0xff]  }
  0x54   :  { %2535 = vmatpush3.bf16.msra.mxu0 %v2785_v34  ;;  %v2833_v34 = vld [vmem:[%s3568_s1 + $0x400] sm:$0xff]  }
  0x55   :  { %2557 = vmatpush3.bf16.msra.mxu1 %v2786_v35  ;;  %2536 = vmatprep.subr.bf16.mxu0 %v2787_v36  ;;  %v2834_v35 = vld [vmem:[%s3568_s1 + $0x480] sm:$0xff]   ;;  %v2835_v36 = vld [vmem:[%s3568_s1 + $0x448] sm:$0xff]  }
  0x56   :  { %2558 = vmatprep.subr.bf16.mxu1 %v2788_v37  ;;  %v2836_v37 = vld [vmem:[%s3568_s1 + $0x4c8] sm:$0xff]  }
  0x58   :  { %2537 = vmatpush3.bf16.msra.mxu0 %v2789_v38  ;;  %v2837_v38 = vld [vmem:[%s3568_s1 + $0x408] sm:$0xff]  }
  0x59   :  { %2559 = vmatpush3.bf16.msra.mxu1 %v2790_v39  ;;  %2538 = vmatprep.subr.bf16.mxu0 %v2791_v40  ;;  %v2838_v39 = vld [vmem:[%s3568_s1 + $0x488] sm:$0xff]   ;;  %v2839_v40 = vld [vmem:[%s3568_s1 + $0x450] sm:$0xff]  }
  0x5a   :  { %2560 = vmatprep.subr.bf16.mxu1 %v2792_v41  ;;  %v2840_v41 = vld [vmem:[%s3568_s1 + $0x4d0] sm:$0xff]  }
  0x5c   :  { %2539 = vmatpush3.bf16.msra.mxu0 %v2793_v42  ;;  %v2841_v42 = vld [vmem:[%s3568_s1 + $0x410] sm:$0xff]  }
  0x5d   :  { %2561 = vmatpush3.bf16.msra.mxu1 %v2794_v43  ;;  %2540 = vmatprep.subr.bf16.mxu0 %v2795_v44  ;;  %v2842_v43 = vld [vmem:[%s3568_s1 + $0x490] sm:$0xff]   ;;  %v2843_v44 = vld [vmem:[%s3568_s1 + $0x458] sm:$0xff]  }
  0x5e   :  { %2562 = vmatprep.subr.bf16.mxu1 %v2796_v45  ;;  %v2844_v45 = vld [vmem:[%s3568_s1 + $0x4d8] sm:$0xff]  }
  0x60   :  { %2541 = vmatpush3.bf16.msra.mxu0 %v2797_v46  ;;  %v2845_v46 = vld [vmem:[%s3568_s1 + $0x418] sm:$0xff]  }
  0x61   :  { %2563 = vmatpush3.bf16.msra.mxu1 %v2798_v47  ;;  %2570 = vmatprep.subr.bf16.mxu0 %v2799_v56  ;;  %v2846_v47 = vld [vmem:[%s3568_s1 + $0x498] sm:$0xff]   ;;  %v2855_v56 = vld [vmem:[%s3568_s1 + $0x470] sm:$0xff]  }
  0x62   :  { %2592 = vmatprep.subr.bf16.mxu1 %v2800_v57  ;;  %v2856_v57 = vld [vmem:[%s3568_s1 + $0x4f0] sm:$0xff]  }
  0x63   :  { %1900 = vmatmul.mubr.bf16.vlgmr.msra.gmra.mrb[8].mxu0 %v2230_v52  ;;  %v2851_v52 = vld [vmem:[%s3568_s1 + $0x468] sm:$0xff]  }
  0x64   :  { %1941 = vmatmul.mubr.bf16.vlgmr.msra.gmra.mrb[8].mxu1 %v2232_v54  ;;  %2571 = vmatpush3.bf16.msra.mxu0 %v2801_v58  ;;  %v2853_v54 = vld [vmem:[%s3568_s1 + $0x428] sm:$0xff]   ;;  %v2857_v58 = vld [vmem:[%s3568_s1 + $0x430] sm:$0xff]  }
  0x65   :  { %2593 = vmatpush3.bf16.msra.mxu1 %v2802_v59  ;;  %2572 = vmatprep.subr.bf16.mxu0 %v2803_v60  ;;  %v2858_v59 = vld [vmem:[%s3568_s1 + $0x4b0] sm:$0xff]   ;;  %v2859_v60 = vld [vmem:[%s3568_s1 + $0x478] sm:$0xff]  }
  0x66   :  { %2594 = vmatprep.subr.bf16.mxu1 %v2804_v61  ;;  %1981 = vmatprep.mubr.bf16.mxu0 %v2235_v28  ;;  %v2860_v61 = vld [vmem:[%s3568_s1 + $0x4f8] sm:$0xff]   ;;  %v2883_v28 = vld [vmem:[%s3568_s1 + $0x568] sm:$0xff]  }
  0x67   :  { %2022 = vmatprep.mubr.bf16.mxu1 %v2237_v31  ;;  %v2886_v31 = vld [vmem:[%s3568_s1 + $0x5a8] sm:$0xff]  }
  0x68   :  { %2573 = vmatpush3.bf16.msra.mxu0 %v2805_v62  ;;  %v2861_v62 = vld [vmem:[%s3568_s1 + $0x438] sm:$0xff]  }
  0x69   :  { %2595 = vmatpush3.bf16.msra.mxu1 %v2806_v63  ;;  %2574 = vmatprep.subr.bf16.mxu0 %v2807_v0  ;;  %v2862_v63 = vld [vmem:[%s3568_s1 + $0x4b8] sm:$0xff]   ;;  %v31_v0 = vld [vmem:[%s3569_s0 + $0x40] sm:$0xff] }
  0x6a   :  { %2596 = vmatprep.subr.bf16.mxu1 %v2808_v1  ;;  %v43_v1 = vld [vmem:[%s3569_s0 + $0xa0] sm:$0xff] }
  0x6c   :  { %2575 = vmatpush3.bf16.msra.mxu0 %v2809_v2  ;;  %v2238_v2 = vcombine.low %v31_v0, %v43_v1 }
  0x6d   :  { %2597 = vmatpush3.bf16.msra.mxu1 %v2810_v3  ;;  %2576 = vmatprep.subr.bf16.mxu0 %v2811_v4  ;;  %v2239_v3 = vcombine.high %v31_v0, %v43_v1  ;;  %v32_v4 = vld [vmem:[%s3569_s0 + $0x48] sm:$0xff] }
  0x6e   :  { %2598 = vmatprep.subr.bf16.mxu1 %v2812_v5  ;;  %v44_v5 = vld [vmem:[%s3569_s0 + $0xa8] sm:$0xff] }
  0x70   :  { %2577 = vmatpush3.bf16.msra.mxu0 %v2813_v6  ;;  %v2240_v6 = vcombine.low %v32_v4, %v44_v5 }
  0x71   :  { %2599 = vmatpush3.bf16.msra.mxu1 %v2814_v7  ;;  %2578 = vmatprep.subr.bf16.mxu0 %v2815_v8  ;;  %v2241_v7 = vcombine.high %v32_v4, %v44_v5  ;;  %v2863_v8 = vld [vmem:[%s3568_s1 + $0x540] sm:$0xff]  }
  0x72   :  { %2600 = vmatprep.subr.bf16.mxu1 %v2816_v9  ;;  %v2864_v9 = vld [vmem:[%s3568_s1 + $0x5c0] sm:$0xff]  }
  0x74   :  { %2579 = vmatpush3.bf16.msra.mxu0 %v2817_v10  ;;  %v2865_v10 = vld [vmem:[%s3568_s1 + $0x500] sm:$0xff]  }
  0x75   :  { %2601 = vmatpush3.bf16.msra.mxu1 %v2818_v11  ;;  %2580 = vmatprep.subr.bf16.mxu0 %v2819_v12  ;;  %v2866_v11 = vld [vmem:[%s3568_s1 + $0x580] sm:$0xff]   ;;  %v2867_v12 = vld [vmem:[%s3568_s1 + $0x548] sm:$0xff]  }
  0x76   :  { %2602 = vmatprep.subr.bf16.mxu1 %v2820_v13  ;;  %v2868_v13 = vld [vmem:[%s3568_s1 + $0x5c8] sm:$0xff]  }
  0x78   :  { %2581 = vmatpush3.bf16.msra.mxu0 %v2821_v14  ;;  %v2869_v14 = vld [vmem:[%s3568_s1 + $0x508] sm:$0xff]  }
  0x79   :  { %2603 = vmatpush3.bf16.msra.mxu1 %v2822_v15  ;;  %2582 = vmatprep.subr.bf16.mxu0 %v2823_v16  ;;  %v2870_v15 = vld [vmem:[%s3568_s1 + $0x588] sm:$0xff]   ;;  %v2871_v16 = vld [vmem:[%s3568_s1 + $0x550] sm:$0xff]  }
  0x7a   :  { %2604 = vmatprep.subr.bf16.mxu1 %v2824_v17  ;;  %v2872_v17 = vld [vmem:[%s3568_s1 + $0x5d0] sm:$0xff]  }
  0x7c   :  { %2583 = vmatpush3.bf16.msra.mxu0 %v2825_v18  ;;  %v2873_v18 = vld [vmem:[%s3568_s1 + $0x510] sm:$0xff]  }
  0x7d   :  { %2605 = vmatpush3.bf16.msra.mxu1 %v2826_v19  ;;  %2584 = vmatprep.subr.bf16.mxu0 %v2827_v20  ;;  %v2874_v19 = vld [vmem:[%s3568_s1 + $0x590] sm:$0xff]   ;;  %v2875_v20 = vld [vmem:[%s3568_s1 + $0x558] sm:$0xff]  }
  0x7e   :  { %2606 = vmatprep.subr.bf16.mxu1 %v2828_v21  ;;  %v2876_v21 = vld [vmem:[%s3568_s1 + $0x5d8] sm:$0xff]  }
  0x80   :  { %2585 = vmatpush3.bf16.msra.mxu0 %v2829_v22  ;;  %v2877_v22 = vld [vmem:[%s3568_s1 + $0x518] sm:$0xff]  }
  0x81   :  { %2607 = vmatpush3.bf16.msra.mxu1 %v2830_v23  ;;  %2614 = vmatprep.subr.bf16.mxu0 %v2831_v32  ;;  %v2878_v23 = vld [vmem:[%s3568_s1 + $0x598] sm:$0xff]   ;;  %v2887_v32 = vld [vmem:[%s3568_s1 + $0x570] sm:$0xff]  }
  0x82   :  { %2636 = vmatprep.subr.bf16.mxu1 %v2832_v33  ;;  %v2888_v33 = vld [vmem:[%s3568_s1 + $0x5f0] sm:$0xff]  }
  0x83   :  { %1982 = vmatmul.mubr.bf16.vlgmr.msra.gmra.mrb[12].mxu0 %v2234_v27  ;;  %v2882_v27 = vld [vmem:[%s3568_s1 + $0x5a0] sm:$0xff]  }
  0x84   :  { %2023 = vmatmul.mubr.bf16.vlgmr.msra.gmra.mrb[12].mxu1 %v2236_v30  ;;  %2615 = vmatpush3.bf16.msra.mxu0 %v2833_v34  ;;  %v2885_v30 = vld [vmem:[%s3568_s1 + $0x528] sm:$0xff]   ;;  %v2889_v34 = vld [vmem:[%s3568_s1 + $0x530] sm:$0xff]  }
  0x85   :  { %2637 = vmatpush3.bf16.msra.mxu1 %v2834_v35  ;;  %2616 = vmatprep.subr.bf16.mxu0 %v2835_v36  ;;  %v2890_v35 = vld [vmem:[%s3568_s1 + $0x5b0] sm:$0xff]   ;;  %v2891_v36 = vld [vmem:[%s3568_s1 + $0x578] sm:$0xff]  }
  0x86   :  { %2638 = vmatprep.subr.bf16.mxu1 %v2836_v37  ;;  %2063 = vmatprep.mubr.bf16.mxu0 %v2239_v3  ;;  %v2892_v37 = vld [vmem:[%s3568_s1 + $0x5f8] sm:$0xff]  }
  0x87   :  { %2104 = vmatprep.mubr.bf16.mxu1 %v2241_v7 }
  0x88   :  { %2617 = vmatpush3.bf16.msra.mxu0 %v2837_v38  ;;  %v2893_v38 = vld [vmem:[%s3568_s1 + $0x538] sm:$0xff]  }
  0x89   :  { %2639 = vmatpush3.bf16.msra.mxu1 %v2838_v39  ;;  %2618 = vmatprep.subr.bf16.mxu0 %v2839_v40  ;;  %v2894_v39 = vld [vmem:[%s3568_s1 + $0x5b8] sm:$0xff]   ;;  %v33_v40 = vld [vmem:[%s3569_s0 + $0x50] sm:$0xff] }
  0x8a   :  { %2640 = vmatprep.subr.bf16.mxu1 %v2840_v41  ;;  %v45_v41 = vld [vmem:[%s3569_s0 + $0xb0] sm:$0xff] }
  0x8c   :  { %2619 = vmatpush3.bf16.msra.mxu0 %v2841_v42  ;;  %v34_v42 = vld [vmem:[%s3569_s0 + $0x58] sm:$0xff] }
  0x8d   :  { %2641 = vmatpush3.bf16.msra.mxu1 %v2842_v43  ;;  %2620 = vmatprep.subr.bf16.mxu0 %v2843_v44  ;;  %v46_v43 = vld [vmem:[%s3569_s0 + $0xb8] sm:$0xff]  ;;  %v2242_v44 = vcombine.low %v33_v40, %v45_v41 }
  0x8e   :  { %2642 = vmatprep.subr.bf16.mxu1 %v2844_v45  ;;  %v2243_v45 = vcombine.high %v33_v40, %v45_v41 }
  0x90   :  { %2621 = vmatpush3.bf16.msra.mxu0 %v2845_v46  ;;  %v2244_v46 = vcombine.low %v34_v42, %v46_v43 }
  0x91   :  { %2643 = vmatpush3.bf16.msra.mxu1 %v2846_v47  ;;  %2622 = vmatprep.subr.bf16.mxu0 %v2847_v48  ;;  %v2245_v47 = vcombine.high %v34_v42, %v46_v43 }
  0x92   :  { %2644 = vmatprep.subr.bf16.mxu1 %v2848_v49 }
  0x94   :  { %2623 = vmatpush3.bf16.msra.mxu0 %v2849_v50 }
  0x95   :  { %2645 = vmatpush3.bf16.msra.mxu1 %v2850_v51  ;;  %2624 = vmatprep.subr.bf16.mxu0 %v2851_v52 }
  0x96   :  { %2646 = vmatprep.subr.bf16.mxu1 %v2852_v53 }
  0x98   :  { %2625 = vmatpush3.bf16.msra.mxu0 %v2853_v54 }
  0x99   :  { %2647 = vmatpush3.bf16.msra.mxu1 %v2854_v55  ;;  %2626 = vmatprep.subr.bf16.mxu0 %v2855_v56 }
  0x9a   :  { %2648 = vmatprep.subr.bf16.mxu1 %v2856_v57 }
  0x9c   :  { %2627 = vmatpush3.bf16.msra.mxu0 %v2857_v58 }
  0x9d   :  { %2649 = vmatpush3.bf16.msra.mxu1 %v2858_v59  ;;  %2628 = vmatprep.subr.bf16.mxu0 %v2859_v60 }
  0x9e   :  { %2650 = vmatprep.subr.bf16.mxu1 %v2860_v61 }
  0xa0   :  { %2629 = vmatpush3.bf16.msra.mxu0 %v2861_v62 }
  0xa1   :  { %2651 = vmatpush3.bf16.msra.mxu1 %v2862_v63  ;;  %2658 = vmatprep.subr.bf16.mxu0 %v2863_v8 }
  0xa2   :  { %2680 = vmatprep.subr.bf16.mxu1 %v2864_v9 }
  0xa3   :  { %2064 = vmatmul.mubr.bf16.vlgmr.msra.gmra.mrb[16].mxu0 %v2238_v2 }
  0xa4   :  { %2105 = vmatmul.mubr.bf16.vlgmr.msra.gmra.mrb[16].mxu1 %v2240_v6  ;;  %2659 = vmatpush3.bf16.msra.mxu0 %v2865_v10 }
  0xa5   :  { %2681 = vmatpush3.bf16.msra.mxu1 %v2866_v11  ;;  %2660 = vmatprep.subr.bf16.mxu0 %v2867_v12 }
  0xa6   :  { %2682 = vmatprep.subr.bf16.mxu1 %v2868_v13  ;;  %2145 = vmatprep.mubr.bf16.mxu0 %v2243_v45 }
  0xa7   :  { %2186 = vmatprep.mubr.bf16.mxu1 %v2245_v47 }
  0xa8   :  { %2661 = vmatpush3.bf16.msra.mxu0 %v2869_v14 }
  0xa9   :  { %2683 = vmatpush3.bf16.msra.mxu1 %v2870_v15  ;;  %2662 = vmatprep.subr.bf16.mxu0 %v2871_v16 }
  0xaa   :  { %2684 = vmatprep.subr.bf16.mxu1 %v2872_v17 }
  0xac   :  { %2663 = vmatpush3.bf16.msra.mxu0 %v2873_v18 }
  0xad   :  { %2685 = vmatpush3.bf16.msra.mxu1 %v2874_v19  ;;  %2664 = vmatprep.subr.bf16.mxu0 %v2875_v20 }
  0xae   :  { %2686 = vmatprep.subr.bf16.mxu1 %v2876_v21 }
  0xb0   :  { %2665 = vmatpush3.bf16.msra.mxu0 %v2877_v22 }
  0xb1   :  { %2687 = vmatpush3.bf16.msra.mxu1 %v2878_v23  ;;  %2666 = vmatprep.subr.bf16.mxu0 %v2879_v24 }
  0xb2   :  { %2688 = vmatprep.subr.bf16.mxu1 %v2880_v25 }
  0xb4   :  { %2667 = vmatpush3.bf16.msra.mxu0 %v2881_v26 }
  0xb5   :  { %2689 = vmatpush3.bf16.msra.mxu1 %v2882_v27  ;;  %2668 = vmatprep.subr.bf16.mxu0 %v2883_v28 }
  0xb6   :  { %2690 = vmatprep.subr.bf16.mxu1 %v2884_v29 }
  0xb8   :  { %2669 = vmatpush3.bf16.msra.mxu0 %v2885_v30 }
  0xb9   :  { %2691 = vmatpush3.bf16.msra.mxu1 %v2886_v31  ;;  %2670 = vmatprep.subr.bf16.mxu0 %v2887_v32 }
  0xba   :  { %2692 = vmatprep.subr.bf16.mxu1 %v2888_v33 }
  0xbc   :  { %2671 = vmatpush3.bf16.msra.mxu0 %v2889_v34 }
  0xbd   :  { %2693 = vmatpush3.bf16.msra.mxu1 %v2890_v35  ;;  %2672 = vmatprep.subr.bf16.mxu0 %v2891_v36 }
  0xbe   :  { %2694 = vmatprep.subr.bf16.mxu1 %v2892_v37 }
  0xc0   :  { %2673 = vmatpush3.bf16.msra.mxu0 %v2893_v38 }
  0xc1   :  { %2695 = vmatpush3.bf16.msra.mxu1 %v2894_v39 }
  0xc3   :  { %2146 = vmatmul.mubr.bf16.vlgmr.msra.gmra.mrb[20].mxu0 %v2242_v44 }
  0xc4   :  { %2187 = vmatmul.mubr.bf16.vlgmr.msra.gmra.mrb[20].mxu1 %v2244_v46 }
  0xf6   :  { %v2454_v48 = vpop.f32.mrb[0].mxu0 }
  0xf7   :  { %v2476_v49 = vpop.f32.mrb[0].mxu1  ;;  %v2455_v50 = vpop.f32.mrb[1].mxu0 }
  0xf8   :  { %v2456_v51 = vadd.f32 %v2455_v50, %v2454_v48  ;;  %v2477_v52 = vpop.f32.mrb[1].mxu1  ;;  %v2457_v53 = vpop.f32.mrb[2].mxu0 }
  0xf9   :  { %v2478_v54 = vadd.f32 %v2477_v52, %v2476_v49  ;;  %v2479_v55 = vpop.f32.mrb[2].mxu1  ;;  %v2458_v56 = vpop.f32.mrb[3].mxu0 }
  0xfa   :  { %v2459_v57 = vadd.f32 %v2458_v56, %v2457_v53  ;;  %v2480_v58 = vpop.f32.mrb[3].mxu1 }
  0xfb   :  { %v1779_v59 = vadd.f32 %v2478_v54, %v2456_v51  ;;  %v2481_v60 = vadd.f32 %v2480_v58, %v2479_v55 }
  0xfd   :  { %v1782_v61 = vadd.f32 %v2481_v60, %v2459_v57 }
 0x116   :  { %v2498_v62 = vpop.f32.mrb[4].mxu0 }
 0x117   :  { %v2520_v63 = vpop.f32.mrb[4].mxu1  ;;  %v2499_v0 = vpop.f32.mrb[5].mxu0 }
 0x118   :  { %v2500_v1 = vadd.f32 %v2499_v0, %v2498_v62  ;;  %v2521_v2 = vpop.f32.mrb[5].mxu1  ;;  %v2501_v3 = vpop.f32.mrb[6].mxu0 }
 0x119   :  { %v2522_v4 = vadd.f32 %v2521_v2, %v2520_v63  ;;  %v2523_v5 = vpop.f32.mrb[6].mxu1  ;;  %v2502_v6 = vpop.f32.mrb[7].mxu0 }
 0x11a   :  { %v1820_v7 = vadd.f32 %v2500_v1, %v1779_v59  ;;  %v2503_v8 = vadd.f32 %v2502_v6, %v2501_v3  ;;  %v2524_v9 = vpop.f32.mrb[7].mxu1 }
 0x11b   :  { %v2525_v10 = vadd.f32 %v2524_v9, %v2523_v5 }
 0x11c   :  { %v1861_v11 = vadd.f32 %v2522_v4, %v1820_v7  ;;  %v1823_v12 = vadd.f32 %v2503_v8, %v1782_v61 }
 0x11e   :  { %v1864_v13 = vadd.f32 %v2525_v10, %v1823_v12 }
 0x136   :  { %v2542_v14 = vpop.f32.mrb[8].mxu0 }
 0x137   :  { %v2564_v15 = vpop.f32.mrb[8].mxu1  ;;  %v2543_v16 = vpop.f32.mrb[9].mxu0 }
 0x138   :  { %v2565_v17 = vpop.f32.mrb[9].mxu1  ;;  %v2544_v18 = vadd.f32 %v2543_v16, %v2542_v14  ;;  %v2545_v20 = vpop.f32.mrb[10].mxu0 }
 0x139   :  { %v2566_v19 = vadd.f32 %v2565_v17, %v2564_v15  ;;  %v2567_v21 = vpop.f32.mrb[10].mxu1  ;;  %v2546_v22 = vpop.f32.mrb[11].mxu0 }
 0x13a   :  { %v2568_v23 = vpop.f32.mrb[11].mxu1  ;;  %v1902_v24 = vadd.f32 %v2544_v18, %v1861_v11  ;;  %v2547_v25 = vadd.f32 %v2546_v22, %v2545_v20 }
 0x13b   :  { %v2569_v26 = vadd.f32 %v2568_v23, %v2567_v21 }
 0x13c   :  { %v1943_v27 = vadd.f32 %v2566_v19, %v1902_v24  ;;  %v1905_v28 = vadd.f32 %v2547_v25, %v1864_v13 }
 0x13e   :  { %v1946_v29 = vadd.f32 %v2569_v26, %v1905_v28 }
 0x156   :  { %v2586_v30 = vpop.f32.mrb[12].mxu0 }
 0x157   :  { %v2608_v31 = vpop.f32.mrb[12].mxu1  ;;  %v2587_v32 = vpop.f32.mrb[13].mxu0 }
 0x158   :  { %v2588_v33 = vadd.f32 %v2587_v32, %v2586_v30  ;;  %v2609_v34 = vpop.f32.mrb[13].mxu1  ;;  %v2589_v35 = vpop.f32.mrb[14].mxu0 }
 0x159   :  { %v2610_v36 = vadd.f32 %v2609_v34, %v2608_v31  ;;  %v2611_v37 = vpop.f32.mrb[14].mxu1  ;;  %v2590_v38 = vpop.f32.mrb[15].mxu0 }
 0x15a   :  { %v1984_v39 = vadd.f32 %v2588_v33, %v1943_v27  ;;  %v2591_v40 = vadd.f32 %v2590_v38, %v2589_v35  ;;  %v2612_v41 = vpop.f32.mrb[15].mxu1 }
 0x15b   :  { %v2613_v42 = vadd.f32 %v2612_v41, %v2611_v37 }
 0x15c   :  { %v2025_v43 = vadd.f32 %v2610_v36, %v1984_v39  ;;  %v1987_v44 = vadd.f32 %v2591_v40, %v1946_v29 }
 0x15e   :  { %v2028_v45 = vadd.f32 %v2613_v42, %v1987_v44 }
 0x176   :  { %v2630_v46 = vpop.f32.mrb[16].mxu0 }
 0x177   :  { %v2652_v47 = vpop.f32.mrb[16].mxu1  ;;  %v2631_v48 = vpop.f32.mrb[17].mxu0 }
 0x178   :  { %v2632_v49 = vadd.f32 %v2631_v48, %v2630_v46  ;;  %v2653_v50 = vpop.f32.mrb[17].mxu1  ;;  %v2633_v51 = vpop.f32.mrb[18].mxu0 }
 0x179   :  { %v2654_v52 = vadd.f32 %v2653_v50, %v2652_v47  ;;  %v2655_v53 = vpop.f32.mrb[18].mxu1  ;;  %v2634_v54 = vpop.f32.mrb[19].mxu0 }
 0x17a   :  { %v2066_v55 = vadd.f32 %v2632_v49, %v2025_v43  ;;  %v2635_v56 = vadd.f32 %v2634_v54, %v2633_v51  ;;  %v2656_v57 = vpop.f32.mrb[19].mxu1 }
 0x17b   :  { %v2657_v58 = vadd.f32 %v2656_v57, %v2655_v53 }
 0x17c   :  { %v2107_v59 = vadd.f32 %v2654_v52, %v2066_v55  ;;  %v2069_v60 = vadd.f32 %v2635_v56, %v2028_v45 }
 0x17e   :  { %v2110_v61 = vadd.f32 %v2657_v58, %v2069_v60 }
 0x196   :  { %v2674_v62 = vpop.f32.mrb[20].mxu0 }
 0x197   :  { %v2696_v63 = vpop.f32.mrb[20].mxu1  ;;  %v2675_v0 = vpop.f32.mrb[21].mxu0 }
 0x198   :  { %v2697_v1 = vpop.f32.mrb[21].mxu1  ;;  %v2676_v2 = vadd.f32 %v2675_v0, %v2674_v62  ;;  %v2677_v4 = vpop.f32.mrb[22].mxu0 }
 0x199   :  { %v2698_v3 = vadd.f32 %v2697_v1, %v2696_v63  ;;  %v2699_v5 = vpop.f32.mrb[22].mxu1  ;;  %v2678_v6 = vpop.f32.mrb[23].mxu0 }
 0x19a   :  { %v2700_v7 = vpop.f32.mrb[23].mxu1  ;;  %v2148_v8 = vadd.f32 %v2676_v2, %v2107_v59  ;;  %v2679_v9 = vadd.f32 %v2678_v6, %v2677_v4 }
 0x19b   :  { %v2701_v10 = vadd.f32 %v2700_v7, %v2699_v5 }
 0x19c   :  { %v2189_v11 = vadd.f32 %v2698_v3, %v2148_v8  ;;  %v2151_v12 = vadd.f32 %v2679_v9, %v2110_v61 }
 0x19e   :  { %v2192_v13 = vadd.f32 %v2701_v10, %v2151_v12  ;;  %v2204_v14 = vmul.f32 %v2189_v11, %v2189_v11 }
 0x1a0   :  { %2206 = vadd.xlane.f32.xlu0 %v2204_v14  ;;  %v2205_v15 = vmul.f32 %v2192_v13, %v2192_v13 }
 0x1a4   :  { %2208 = vadd.xlane.f32.xlu0 %v2205_v15 }
 0x22d   :  { %v2207_v16 = vpop.xlane.xlu0 %2206 }
 0x22e   :  { %v2210_v17 = vadd.f32 1e-06, %v2207_v16 }
 0x230   :  { %2895 = vrsqrt.f32 %v2210_v17 }
 0x231   :  { %v2209_v18 = vpop.xlane.xlu0 %2208 }
 0x232   :  { %v2211_v19 = vadd.f32 1e-06, %v2209_v18 }
 0x234   :  { %2897 = vrsqrt.f32 %v2211_v19 }
 0x23a   :  { %v2896_v20 = vpop.eup %2895 }
 0x23b   :  { %v2214_v21 = vmul.f32 %v2896_v20, %v2189_v11 }
 0x23d   :  { %2216 = vst [vmem:[%s3570_s2] sm:$0xff] %v2214_v21 }
 0x23e   :  { %v2898_v22 = vpop.eup %2897 }
 0x23f   :  { %v2215_v23 = vmul.f32 %v2898_v22, %v2192_v13 }
 0x241   :  { %2217 = vst [vmem:[%s3570_s2 + $0x8] sm:$0xff] %v2215_v23 }

// kernel: feature_extractor_forward.2
= control target key start
LH: loop header
LB: loop body
LE: loop exit
PB: predicated region body
PF: predicated region fallthrough
CT: control target
= control target key end

     0   :  { %v516_v0 = vmov 0.0   ;;  %vm517_vm0 = vmmov 0   ;;  %vm25_vm1 = vcmask 523264   ;;  %s661_s1 = inlined_call_operand.vmem [shape: bf16[64,128], index: 1, kind: input, shape index: {}]   ;;  %s662_s2 = inlined_call_operand.vmem [shape: bf16[128,128], index: 2, kind: input, shape index: {}]   ;;  %s663_s0 = inlined_call_operand.vmem [shape: f32[16,64], index: 0, kind: input, shape index: {}]   ;;  %s664_s3 = inlined_call_operand.vmem [shape: f32[128,128], index: 3, kind: input, shape index: {}]   ;;  %s665_s5 = inlined_call_operand.vmem [shape: f32[16,128], index: 5, kind: output, shape index: {0}]   ;;  %s666_s4 = inlined_call_operand.vmem [shape: f32[1,128], index: 4, kind: input, shape index: {}]   ;;  %s667_s6 = inlined_call_operand.vmem [shape: f32[16,128], index: 6, kind: output, shape index: {1}]  }
   0x1   :  { %391 = vmatprep.subr.bf16.mxu0 %v516_v0  ;;  %v492_v1 = vld [vmem:[%s661_s1] sm:$0xff]   ;;  %399 = vmatprep.mubr.msk.bf16.mxu0 %vm517_vm0, %v516_v0  ;;  %v493_v2 = vld [vmem:[%s661_s1 + $0x8] sm:$0xff]   ;;  %v494_v4 = vld [vmem:[%s661_s1 + $0x10] sm:$0xff]  }
   0x2   :  { %403 = vmatprep.subr.bf16.mxu1 %v516_v0  ;;  %419 = vmatprep.mubr.msk.bf16.mxu1 %vm517_vm0, %v516_v0  ;;  %v496_v3 = vld [vmem:[%s662_s2] sm:$0xff]   ;;  %v497_v5 = vld [vmem:[%s662_s2 + $0x8] sm:$0xff]   ;;  %v495_v6 = vld [vmem:[%s661_s1 + $0x18] sm:$0xff]  }
   0x3   :  { %392 = vmatpush3.bf16.msra.mxu0 %v492_v1  ;;  %404 = vmatpush3.bf16.msra.mxu1 %v496_v3  ;;  %v23_v7 = vld [vmem:[%s663_s0] sm:$0xff]  ;;  %v24_v8 = vld [vmem:[%s663_s0 + $0x8] sm:$0xff]  ;;  %v498_v9 = vld [vmem:[%s662_s2 + $0x10] sm:$0xff]  }
   0x4   :  { %393 = vmatprep.subr.bf16.mxu0 %v516_v0  ;;  %405 = vmatprep.subr.bf16.mxu1 %v516_v0  ;;  %v34_v10 = vpack.c.bf16 %v24_v8, %v23_v7  ;;  %v499_v11 = vld [vmem:[%s662_s2 + $0x18] sm:$0xff]   ;;  %v500_v12 = vld [vmem:[%s662_s2 + $0x20] sm:$0xff]   ;;  %v501_v13 = vld [vmem:[%s662_s2 + $0x28] sm:$0xff]   ;;  %v26_v16 = vsel %vm25_vm1, %v23_v7, 0.0  ;;  %v29_v20 = vsel %vm25_vm1, %v24_v8, 0.0 }
   0x5   :  { %v502_v14 = vld [vmem:[%s662_s2 + $0x30] sm:$0xff]   ;;  %v503_v15 = vld [vmem:[%s662_s2 + $0x38] sm:$0xff]   ;;  %27 = vadd.xlane.f32.xlu0 %v26_v16  ;;  %v223_v17 = vld [vmem:[%s664_s3] sm:$0xff] }
   0x6   :  { %v224_v18 = vld [vmem:[%s664_s3 + $0x8] sm:$0xff]  ;;  %v225_v19 = vld [vmem:[%s664_s3 + $0x10] sm:$0xff]  ;;  %v226_v22 = vld [vmem:[%s664_s3 + $0x18] sm:$0xff] }
   0x7   :  { %394 = vmatpush3.bf16.msra.mxu0 %v493_v2  ;;  %406 = vmatpush3.bf16.msra.mxu1 %v497_v5  ;;  %v458_v21 = vpack.c.bf16 %v224_v18, %v223_v17  ;;  %v462_v23 = vpack.c.bf16 %v226_v22, %v225_v19  ;;  %v227_v24 = vld [vmem:[%s664_s3 + $0x20] sm:$0xff]  ;;  %v228_v25 = vld [vmem:[%s664_s3 + $0x28] sm:$0xff]  ;;  %v229_v27 = vld [vmem:[%s664_s3 + $0x30] sm:$0xff] }
   0x8   :  { %395 = vmatprep.subr.bf16.mxu0 %v516_v0  ;;  %407 = vmatprep.subr.bf16.mxu1 %v516_v0  ;;  %v466_v26 = vpack.c.bf16 %v228_v25, %v227_v24  ;;  %v230_v28 = vld [vmem:[%s664_s3 + $0x38] sm:$0xff]  ;;  %v231_v30 = vld [vmem:[%s664_s3 + $0x40] sm:$0xff]  ;;  %v232_v31 = vld [vmem:[%s664_s3 + $0x48] sm:$0xff] }
   0x9   :  { %30 = vadd.xlane.f32.xlu0 %v29_v20  ;;  %v470_v29 = vpack.c.bf16 %v230_v28, %v229_v27  ;;  %v474_v32 = vpack.c.bf16 %v232_v31, %v231_v30  ;;  %v233_v33 = vld [vmem:[%s664_s3 + $0x50] sm:$0xff]  ;;  %v234_v34 = vld [vmem:[%s664_s3 + $0x58] sm:$0xff]  ;;  %v235_v35 = vld [vmem:[%s664_s3 + $0x60] sm:$0xff] }
   0xa   :  { %v478_v36 = vpack.c.bf16 %v234_v34, %v233_v33  ;;  %v236_v37 = vld [vmem:[%s664_s3 + $0x68] sm:$0xff]  ;;  %v237_v44 = vld [vmem:[%s664_s3 + $0x70] sm:$0xff]  ;;  %v238_v45 = vld [vmem:[%s664_s3 + $0x78] sm:$0xff] }
   0xb   :  { %396 = vmatpush3.bf16.msra.mxu0 %v494_v4  ;;  %408 = vmatpush3.bf16.msra.mxu1 %v498_v9  ;;  %v482_v38 = vpack.c.bf16 %v236_v37, %v235_v35  ;;  %v486_v46 = vpack.c.bf16 %v238_v45, %v237_v44  ;;  %v356_v59 = vld [vmem:[%s666_s4] ss:$0 sm:$0xff] }
   0xc   :  { %397 = vmatprep.subr.bf16.mxu0 %v516_v0  ;;  %409 = vmatprep.subr.bf16.mxu1 %v516_v0 }
   0xf   :  { %398 = vmatpush3.bf16.msra.mxu0 %v495_v6  ;;  %410 = vmatpush3.bf16.msra.mxu1 %v499_v11 }
  0x10   :  { %411 = vmatprep.subr.bf16.mxu1 %v516_v0  ;;  %459 = vmatprep.subr.bf16.mxu0 %v458_v21 }
  0x12   :  { %400 = vmatmul.mubr.msk.bf16.vlgmr.msra.gmra.mrb[0].mxu0 %vm25_vm1, %v34_v10 }
  0x13   :  { %412 = vmatpush3.bf16.msra.mxu1 %v500_v12  ;;  %461 = vmatpush3.bf16.msra.mxu0 %v458_v21 }
  0x14   :  { %413 = vmatprep.subr.bf16.mxu1 %v516_v0  ;;  %463 = vmatprep.subr.bf16.mxu0 %v462_v23 }
  0x17   :  { %414 = vmatpush3.bf16.msra.mxu1 %v501_v13  ;;  %465 = vmatpush3.bf16.msra.mxu0 %v462_v23 }
  0x18   :  { %415 = vmatprep.subr.bf16.mxu1 %v516_v0  ;;  %467 = vmatprep.subr.bf16.mxu0 %v466_v26 }
  0x1b   :  { %416 = vmatpush3.bf16.msra.mxu1 %v502_v14  ;;  %469 = vmatpush3.bf16.msra.mxu0 %v466_v26 }
  0x1c   :  { %417 = vmatprep.subr.bf16.mxu1 %v516_v0  ;;  %471 = vmatprep.subr.bf16.mxu0 %v470_v29 }
  0x1f   :  { %418 = vmatpush3.bf16.msra.mxu1 %v503_v15  ;;  %473 = vmatpush3.bf16.msra.mxu0 %v470_v29 }
  0x20   :  { %475 = vmatprep.subr.bf16.mxu0 %v474_v32 }
  0x23   :  { %477 = vmatpush3.bf16.msra.mxu0 %v474_v32 }
  0x24   :  { %479 = vmatprep.subr.bf16.mxu0 %v478_v36 }
  0x27   :  { %481 = vmatpush3.bf16.msra.mxu0 %v478_v36 }
  0x28   :  { %483 = vmatprep.subr.bf16.mxu0 %v482_v38 }
  0x2b   :  { %485 = vmatpush3.bf16.msra.mxu0 %v482_v38 }
  0x2c   :  { %487 = vmatprep.subr.bf16.mxu0 %v486_v46 }
  0x2f   :  { %489 = vmatpush3.bf16.msra.mxu0 %v486_v46 }
  0x92   :  { %v28_v47 = vpop.xlane.xlu0 %27 }
  0x93   :  { %v32_v49 = vmax.f32 %v28_v47, 1e-06 }
  0x95   :  { %504 = vrcp.f32 %v32_v49 }
  0x96   :  { %v31_v48 = vpop.xlane.xlu0 %30 }
  0x97   :  { %v33_v50 = vmax.f32 %v31_v48, 1e-06 }
  0x99   :  { %506 = vrcp.f32 %v33_v50 }
  0x9f   :  { %v505_v51 = vpop.eup %504 }
  0xa3   :  { %v507_v52 = vpop.eup %506 }
  0xe5   :  { %v104_v39 = vpop.f32.mrb[0].mxu0 }
  0xe6   :  { %v401_v40 = vpop.f32.mrb[1].mxu0 }
  0xe7   :  { %v107_v41 = vpop.f32.mrb[2].mxu0 }
  0xe8   :  { %v111_v42 = vpack.c.bf16 %v107_v41, %v104_v39  ;;  %v402_v43 = vpop.f32.mrb[3].mxu0 }
  0xea   :  { %420 = vmatmul.mubr.bf16.vlgmr.msra.gmra.mrb[0].mxu1 %v111_v42 }
 0x1bd   :  { %v210_v53 = vpop.f32.mrb[0].mxu1 }
 0x1be   :  { %v218_v54 = vmul.f32 %v505_v51, %v210_v53  ;;  %v421_v55 = vpop.f32.mrb[1].mxu1 }
 0x1bf   :  { %v213_v56 = vpop.f32.mrb[2].mxu1 }
 0x1c0   :  { %221 = vst [vmem:[%s665_s5] sm:$0xff] %v218_v54  ;;  %v220_v57 = vmul.f32 %v507_v52, %v213_v56  ;;  %v422_v58 = vpop.f32.mrb[3].mxu1  ;;  %455 = vmatprep.mubr.f32.mxu0 %v218_v54 }
 0x1c2   :  { %222 = vst [vmem:[%s665_s5 + $0x8] sm:$0xff] %v220_v57  ;;  %456 = vmatmul.mubr.f32.vlgmr.msra.gmra.mrb[4].mxu0 %v220_v57 }
 0x295   :  { %v457_v60 = vpop.f32.mrb[4].mxu0 }
 0x296   :  { %v318_v61 = vadd.f32 %v457_v60, %v356_v59  ;;  %v312_v62 = vpop.f32.mrb[5].mxu0 }
 0x297   :  { %v313_v63 = vadd.f32 %v356_v59, %v312_v62 }
 0x298   :  { %v358_v0 = vmul.f32 -1.442695, %v318_v61 }
 0x299   :  { %v357_v1 = vmul.f32 -1.442695, %v313_v63 }
 0x29a   :  { %508 = vpow2.f32 %v358_v0 }
 0x29b   :  { %510 = vpow2.f32 %v357_v1 }
 0x2a4   :  { %v509_v2 = vpop.eup %508 }
 0x2a5   :  { %v511_v3 = vpop.eup %510  ;;  %v328_v4 = vadd.f32 1.0, %v509_v2 }
 0x2a6   :  { %v327_v5 = vadd.f32 1.0, %v511_v3 }
 0x2a7   :  { %512 = vrcp.f32 %v328_v4 }
 0x2a8   :  { %514 = vrcp.f32 %v327_v5 }
 0x2b1   :  { %v513_v6 = vpop.eup %512 }
 0x2b2   :  { %v515_v7 = vpop.eup %514  ;;  %334 = vst [vmem:[%s667_s6 + $0x8] sm:$0xff] %v513_v6 }
 0x2b3   :  { %333 = vst [vmem:[%s667_s6] sm:$0xff] %v515_v7 }

</bundles_post_ra>
